<compile_context>
chip_gen: v6e
topology: v6e:2x2x1
jax: 0.10.0
libtpu: 0.0.40
codegen_flags: <defaults>
</compile_context>

<pallas_src>
import jax
import jax.numpy as jnp
from jax.experimental import pallas as pl
from jax.experimental.pallas import tpu as pltpu


def _round_up(x, m):
    return (x + m - 1) // m * m


def _make_gcn_kernel(proj_first: bool):
    """proj_first=True  : out = relu(A @ (H @ W) + b)   (when out_feats < in_feats)
       proj_first=False : out = relu((A @ H) @ W + b)   (when in_feats <= out_feats)"""

    def kernel(adj_ref, h_ref, w_ref, b_ref, o_ref):
        if proj_first:
            # Small projection first; the big N^2 matmul contracts over out_feats.
            hw = jnp.dot(h_ref[...], w_ref[...], preferred_element_type=jnp.float32)
            z = jnp.dot(adj_ref[...], hw.astype(jnp.bfloat16),
                        preferred_element_type=jnp.float32)
        else:
            # Aggregate first; the big N^2 matmul contracts over in_feats.
            agg = jnp.dot(adj_ref[...], h_ref[...], preferred_element_type=jnp.float32)
            z = jnp.dot(agg.astype(jnp.bfloat16), w_ref[...],
                        preferred_element_type=jnp.float32)
        # Bias + ReLU epilogue (VPU), lane-dense f32 store.
        o_ref[...] = jnp.maximum(z + b_ref[...], 0.0).astype(o_ref.dtype)

    return kernel


def _choose_layout(n, in_feats, out_feats, tm):
    out_p = _round_up(out_feats, 128)            # lane-dense output stores
    tm_eff = min(tm, _round_up(n, 8))            # sublane-aligned row tile
    n_p = _round_up(n, tm_eff)                   # grid divides evenly
    proj_first = out_p < in_feats                # contract big matmul over min dim
    return n_p, out_p, tm_eff, proj_first


def gcn_forward(adj, feature, weight_t, bias, *, tm=128):
    """adj: (N, N) with adj[dst, src]=1.0; feature: (N, in); weight_t: (in, out); bias: (out,)."""
    n, in_feats = feature.shape
    out_feats = weight_t.shape[1]
    assert adj.shape == (n, n)

    n_p, out_p, tm_eff, proj_first = _choose_layout(n, in_feats, out_feats, tm)

    # Pad + cast MXU operands to bf16 (adjacency 0/1 -> lossless); bias stays f32.
    adj_p = jnp.zeros((n_p, n_p), jnp.bfloat16).at[:n, :n].set(adj.astype(jnp.bfloat16))
    h_p = jnp.zeros((n_p, in_feats), jnp.bfloat16).at[:n, :].set(feature.astype(jnp.bfloat16))
    w_p = jnp.zeros((in_feats, out_p), jnp.bfloat16).at[:, :out_feats].set(
        weight_t.astype(jnp.bfloat16))
    b_p = jnp.zeros((1, out_p), jnp.float32).at[:, :out_feats].set(
        bias.reshape(1, -1).astype(jnp.float32))

    grid = (n_p // tm_eff,)

    out_padded = pl.pallas_call(
        _make_gcn_kernel(proj_first),
        out_shape=jax.ShapeDtypeStruct((n_p, out_p), jnp.float32),
        grid=grid,
        in_specs=[
            # Streamed: one row-tile of the adjacency per grid step (double-buffered).
            pl.BlockSpec((tm_eff, n_p), lambda i: (i, 0)),
            # Resident across the whole grid.
            pl.BlockSpec((n_p, in_feats), lambda i: (0, 0)),
            pl.BlockSpec((in_feats, out_p), lambda i: (0, 0)),
            pl.BlockSpec((1, out_p), lambda i: (0, 0)),
        ],
        out_specs=pl.BlockSpec((tm_eff, out_p), lambda i: (i, 0)),
        compiler_params=pltpu.CompilerParams(
            dimension_semantics=("parallel",),      # rows split across v7x's 2 TCs
            vmem_limit_bytes=48 * 1024 * 1024,      # explicit budget, fits v7x 64 MiB VMEM
        ),
    )(adj_p, h_p, w_p, b_p)

    return out_padded[:n, :out_feats]


def gcn_reference_matched(adj, feature, weight_t, bias, *, tm=128):
    """Pure-JAX reference mirroring the kernel's bf16-operand / f32-accumulate dataflow."""
    n, in_feats = feature.shape
    out_feats = weight_t.shape[1]
    _, _, _, proj_first = _choose_layout(n, in_feats, out_feats, tm)
    adj_b = adj.astype(jnp.bfloat16)
    h_b = feature.astype(jnp.bfloat16)
    w_b = weight_t.astype(jnp.bfloat16)
    if proj_first:
        hw = jnp.dot(h_b, w_b, preferred_element_type=jnp.float32)
        z = jnp.dot(adj_b, hw.astype(jnp.bfloat16), preferred_element_type=jnp.float32)
    else:
        agg = jnp.dot(adj_b, h_b, preferred_element_type=jnp.float32)
        z = jnp.dot(agg.astype(jnp.bfloat16), w_b, preferred_element_type=jnp.float32)
    return jnp.maximum(z + bias.reshape(1, -1).astype(jnp.float32), 0.0)


if __name__ == "__main__":
    key = jax.random.PRNGKey(0)
    k_adj, k_feat, k_w, k_b = jax.random.split(key, 4)

    num_nodes = 8
    in_feats = 16
    out_feats = 32

    # Random directed graph as dense adjacency (adj[dst, src] = 1.0 if edge src->dst).
    adj = (jax.random.uniform(k_adj, (num_nodes, num_nodes)) < 0.4).astype(jnp.float32)

    # Node features.
    feature = jax.random.normal(k_feat, (num_nodes, in_feats), dtype=jnp.float32)

    # nn.Linear(in_feats, out_feats) parameters, PyTorch-style uniform init (deterministic).
    bound = 1.0 / (in_feats ** 0.5)
    weight = jax.random.uniform(k_w, (out_feats, in_feats), minval=-bound, maxval=bound)
    bias = jax.random.uniform(k_b, (out_feats,), minval=-bound, maxval=bound)
    weight_t = weight.T.astype(jnp.float32)        # (in_feats, out_feats)
    bias_v = bias.astype(jnp.float32)              # (out_feats,)

    out = gcn_forward(adj, feature, weight_t, bias_v)
    out = jax.block_until_ready(out)
    assert out.shape == (num_nodes, out_feats)

    # Tight check vs a matched-precision (bf16 operand / f32 accumulate) reference.
    ref_matched = gcn_reference_matched(adj, feature, weight_t, bias_v)
    assert jnp.allclose(out, ref_matched, atol=1e-3, rtol=1e-3), \
        "mismatch vs matched-precision reference"

    # Loose sanity check vs full-f32 math (only feature/weight bf16 quantization differs).
    ref_f32 = jnp.maximum(adj @ feature @ weight_t + bias_v[None, :], 0.0)
    assert jnp.allclose(out, ref_f32, atol=5e-2, rtol=5e-2), "mismatch vs f32 reference"

    print("KERNEL_OK")
</pallas_src>

<mosaic_0001>
module attributes {stable_mosaic.version = 11 : i64} {
  func.func @kernel(%arg0: i32, %arg1: memref<8x8xbf16, #tpu.memory_space<vmem>>, %arg2: memref<8x16xbf16, #tpu.memory_space<vmem>>, %arg3: memref<16x128xbf16, #tpu.memory_space<vmem>>, %arg4: memref<1x128xf32, #tpu.memory_space<vmem>>, %arg5: memref<8x128xf32, #tpu.memory_space<vmem>>) attributes {dimension_semantics = [#tpu.dimension_semantics<parallel>], iteration_bounds = array<i64: 1>, scalar_prefetch = 0 : i64, scratch_operands = 0 : i64, tpu.core_type = #tpu.core_type<tc>, window_params = [{transform_indices = @transform_0, window_bounds = array<i64: 8, 8>}, {pipeline_mode = #tpu.pipeline_mode<synchronous>, transform_indices = @transform_1, window_bounds = array<i64: 8, 16>}, {pipeline_mode = #tpu.pipeline_mode<synchronous>, transform_indices = @transform_2, window_bounds = array<i64: 16, 128>}, {pipeline_mode = #tpu.pipeline_mode<synchronous>, transform_indices = @transform_3, window_bounds = array<i64: 1, 128>}, {transform_indices = @transform_4, window_bounds = array<i64: 8, 128>}]} {
    %c0 = arith.constant 0 : index
    %c0_0 = arith.constant 0 : index
    %0 = vector.load %arg1[%c0, %c0_0] : memref<8x8xbf16, #tpu.memory_space<vmem>>, vector<8x8xbf16>
    %c0_1 = arith.constant 0 : index
    %c0_2 = arith.constant 0 : index
    %1 = vector.load %arg2[%c0_1, %c0_2] : memref<8x16xbf16, #tpu.memory_space<vmem>>, vector<8x16xbf16>
    %cst = arith.constant dense<0.000000e+00> : vector<8x16xf32>
    %2 = tpu.matmul %0, %1, %cst {dimension_numbers = #tpu.dot_dimension_numbers<[1], [0], [0], [1], [0, 0, 1, 1], [], []>} : vector<8x8xbf16>, vector<8x16xbf16>, vector<8x16xf32> -> vector<8x16xf32>
    %3 = arith.truncf %2 : vector<8x16xf32> to vector<8x16xbf16>
    %c0_3 = arith.constant 0 : index
    %c0_4 = arith.constant 0 : index
    %4 = vector.load %arg3[%c0_3, %c0_4] : memref<16x128xbf16, #tpu.memory_space<vmem>>, vector<16x128xbf16>
    %cst_5 = arith.constant dense<0.000000e+00> : vector<8x128xf32>
    %5 = tpu.matmul %3, %4, %cst_5 {dimension_numbers = #tpu.dot_dimension_numbers<[1], [0], [0], [1], [0, 0, 1, 1], [], []>} : vector<8x16xbf16>, vector<16x128xbf16>, vector<8x128xf32> -> vector<8x128xf32>
    %c0_6 = arith.constant 0 : index
    %c0_7 = arith.constant 0 : index
    %6 = vector.load %arg4[%c0_6, %c0_7] : memref<1x128xf32, #tpu.memory_space<vmem>>, vector<1x128xf32>
    %7 = vector.broadcast %6 : vector<1x128xf32> to vector<8x128xf32>
    %8 = arith.addf %5, %7 : vector<8x128xf32>
    %cst_8 = arith.constant 0.000000e+00 : f32
    %9 = vector.broadcast %cst_8 : f32 to vector<8x128xf32>
    %10 = arith.maximumf %8, %9 : vector<8x128xf32>
    %c0_9 = arith.constant 0 : index
    %c0_10 = arith.constant 0 : index
    %11 = vector.load %arg5[%c0_9, %c0_10] : memref<8x128xf32, #tpu.memory_space<vmem>>, vector<8x128xf32>
    tpu.vector_store %arg5[%c0_9, %c0_10], %10 {strides = array<i32>} : memref<8x128xf32, #tpu.memory_space<vmem>>, vector<8x128xf32>,
    return
  }
  func.func @transform_0(%arg0: i32) -> (i32, i32) {
    %c0_i32 = arith.constant 0 : i32
    %c0_i32_0 = arith.constant 0 : i32
    return %arg0, %c0_i32 : i32, i32
  }
  func.func @transform_1(%arg0: i32) -> (i32, i32) {
    %c0_i32 = arith.constant 0 : i32
    %c0_i32_0 = arith.constant 0 : i32
    %c0_i32_1 = arith.constant 0 : i32
    return %c0_i32, %c0_i32_0 : i32, i32
  }
  func.func @transform_2(%arg0: i32) -> (i32, i32) {
    %c0_i32 = arith.constant 0 : i32
    %c0_i32_0 = arith.constant 0 : i32
    %c0_i32_1 = arith.constant 0 : i32
    return %c0_i32, %c0_i32_0 : i32, i32
  }
  func.func @transform_3(%arg0: i32) -> (i32, i32) {
    %c0_i32 = arith.constant 0 : i32
    %c0_i32_0 = arith.constant 0 : i32
    %c0_i32_1 = arith.constant 0 : i32
    return %c0_i32, %c0_i32_0 : i32, i32
  }
  func.func @transform_4(%arg0: i32) -> (i32, i32) {
    %c0_i32 = arith.constant 0 : i32
    %c0_i32_0 = arith.constant 0 : i32
    return %arg0, %c0_i32 : i32, i32
  }
}

</mosaic_0001>

<bundles_post_ra>
// kernel: tpu_custom_call.1
= control target key start
LH: loop header
LB: loop body
LE: loop exit
PB: predicated region body
PF: predicated region fallthrough
CT: control target
= control target key end

     0   :  { %9 = vsyncpa [#allocation3], 0  ;;  %s347_s0 = inlined_call_operand.hbm [shape: bf16[8,8], index: 0, kind: input, shape index: {}]   ;;  %s348_s1 = inlined_call_operand.hbm [shape: bf16[8,16], index: 1, kind: input, shape index: {}]   ;;  %s349_s2 = inlined_call_operand.hbm [shape: bf16[16,128], index: 2, kind: input, shape index: {}]   ;;  %s350_s3 = inlined_call_operand.vmem [shape: f32[1,128], index: 3, kind: input, shape index: {}]   ;;  %s351_s4 = inlined_call_operand.hbm [shape: f32[8,128], index: 4, kind: output, shape index: {}]  }
   0x1   :  { %10 = vsyncpa [#allocation6], 0 }
   0x2   :  { %11 = vsyncpa [#allocation4], 0  ;;  %s299_s15 = smov [#allocation5]   ;;  %s300_s17 = smov [#allocation2]  }
   0x3   :  { %s28_s16 = sshll.u32 %s299_s15, 4  ;;  %s18_s18 = sshll.u32 %s300_s17, 4  ;;  %s29_s16 = int_to_ptr.vmem [resolvable:$true] %s28_s16  ;;  %s19_s18 = int_to_ptr.vmem [resolvable:$true] %s18_s18 }
   0x4   :  { %s221_s19 = scalar_lea.vmem %s29_s16, 64  ;;  %p226_p1 = scmp.lt.s32.totalorder %s29_s16, %s29_s16 }
   0x5   :  { %p222_p0 = scmp.ne.s32.totalorder %s29_s16, %s221_s19  ;;  %p227_p2 = scmp.lt.s32.totalorder %s221_s19, %s221_s19 }
   0x7   :  { %p228_p3 = por %p227_p2, %p226_p1 }
   0x9   :  { %p229_p4 = pnand %p228_p3, %p222_p0 }
   0xb   :  { %232 = shalt.err (!%p229_p4)
}
   0xc   :  { %31 = dma.hbm_to_vmem [thread:$0]  %s348_s1, 64, %s29_s16, [#allocation6]  }
   0xd   :  { %s241_s22 = scalar_lea.vmem %s19_s18, 64  ;;  %p246_p6 = scmp.lt.s32.totalorder %s19_s18, %s19_s18 }
   0xe   :  { %p242_p5 = scmp.ne.s32.totalorder %s19_s18, %s241_s22  ;;  %p247_p7 = scmp.lt.s32.totalorder %s241_s22, %s241_s22 }
  0x10   :  { %p248_p8 = por %p247_p7, %p246_p6 }
  0x12   :  { %p249_p9 = pnand %p248_p8, %p242_p5 }
  0x14   :  { %252 = shalt.err (!%p249_p9)
}
  0x15   :  { %21 = dma.hbm_to_vmem [thread:$0]  %s347_s0, 64, %s19_s18, [#allocation3]  }
  0x16   :  { %s301_s25 = smov [#allocation7]  }
  0x17   :  { %s37_s26 = sshll.u32 %s301_s25, 4  ;;  %s38_s26 = int_to_ptr.vmem [resolvable:$true] %s37_s26 }
  0x18   :  { %s261_s27 = scalar_lea.vmem %s38_s26, 128  ;;  %p266_p11 = scmp.lt.s32.totalorder %s38_s26, %s38_s26 }
  0x19   :  { %p262_p10 = scmp.ne.s32.totalorder %s38_s26, %s261_s27  ;;  %p267_p12 = scmp.lt.s32.totalorder %s261_s27, %s261_s27 }
  0x1b   :  { %p268_p13 = por %p267_p12, %p266_p11 }
  0x1d   :  { %p269_p0 = pnand %p268_p13, %p262_p10 }
  0x1f   :  { %272 = shalt.err (!%p269_p0)
}
  0x20   :  { %s302_s1 = smov 64   ;;  %s303_s28 = smov 4  }
  0x21   :  { %43 = dma.hbm_to_vmem [thread:$0]  %s349_s2, 128, %s38_s26, [#allocation6], %s302_s1, %s302_s1, %s303_s28  }
  0x22   :  { %293 = dma.done.wait [#allocation3], 64  }
  0x23   :  { %294 = vsyncadd [#allocation3], 4294967232 }
  0x24   :  { %295 = dma.done.wait [#allocation6], 192  }
  0x25   :  { %296 = vsyncadd [#allocation6], 4294967104  ;;  %v304_v0 = vmov 0.0   ;;  %vm305_vm0 = vmmov 0   ;;  %vm62_vm1 = vcmask 1043456   ;;  %vm58_vm2 = vcmask 64512  }
  0x26   :  { %192 = vmatprep.subr.bf16.mxu0 %v304_v0  ;;  %194 = vmatprep.mubr.msk.bf16.mxu0 %vm305_vm0, %v304_v0  ;;  %v57_v1 = vld [vmem:[#allocation5] sm:$0xf]  ;;  %v56_v3 = vld [vmem:[#allocation2] sm:$0xf]  ;;  %v212_v4 = vld [vmem:[#allocation7] sm:$0xff]   ;;  %vm122_vm3 = vcmask 130048  }
  0x27   :  { %198 = vmatprep.subr.bf16.mxu1 %v304_v0  ;;  %200 = vmatprep.mubr.msk.bf16.mxu1 %vm305_vm0, %v304_v0  ;;  %v64_v2 = vsel %vm62_vm1, %v57_v1, 0  ;;  %v185_v10 = vld [vmem:[%s350_s3] ss:$0 sm:$0xff]  ;;  %s306_s5 = smov [#allocation8]  }
  0x28   :  { %193 = vmatpush3.bf16.msra.mxu0 %v64_v2  ;;  %199 = vmatpush3.bf16.msra.mxu1 %v212_v4  ;;  %s174_s6 = sshll.u32 %s306_s5, 4  ;;  %s175_s6 = int_to_ptr.vmem [resolvable:$true] %s174_s6 }
  0x29   :  { %s273_s7 = scalar_lea.vmem %s175_s6, 128  ;;  %p278_p2 = scmp.lt.s32.totalorder %s175_s6, %s175_s6 }
  0x2a   :  { %p274_p1 = scmp.ne.s32.totalorder %s175_s6, %s273_s7  ;;  %p279_p3 = scmp.lt.s32.totalorder %s273_s7, %s273_s7 }
  0x2b   :  { %195 = vmatmul.mubr.msk.bf16.vlgmr.msra.gmra.mxu0 %vm58_vm2, %v56_v3 }
  0x2c   :  { %p280_p4 = por %p279_p3, %p278_p2 }
  0x2e   :  { %p281_p5 = pnand %p280_p4, %p274_p1 }
  0xeb   :  { %v100_v5 = vpop.f32.mrf.mxu0 }
  0xec   :  { %v106_v6 = vpack.c.bf16 %v100_v5, %v100_v5 }
  0xed   :  { %v196_v7 = vpop.f32.mrf.mxu0 }
  0xee   :  { %201 = vmatmul.mubr.msk.bf16.vlgmr.msra.gmra.mxu1 %vm122_vm3, %v106_v6 }
  0xef   :  { %v103_v8 = vpop.f32.mrf.mxu0 }
  0xf1   :  { %v197_v9 = vpop.f32.mrf.mxu0 }
 0x1ae   :  { %v160_v11 = vpop.f32.mrf.mxu1 }
 0x1af   :  { %v161_v12 = vadd.f32 %v185_v10, %v160_v11 }
 0x1b0   :  { %v202_v13 = vpop.f32.mrf.mxu1 }
 0x1b1   :  { %v166_v14 = vmax.f32 %v161_v12, 0.0 }
 0x1b2   :  { %v163_v15 = vpop.f32.mrf.mxu1 }
 0x1b3   :  { %167 = vst [vmem:[#allocation8] sm:$0xff] %v166_v14 }
 0x1b4   :  { %v203_v16 = vpop.f32.mrf.mxu1 }
 0x1b5   :  { %284 = shalt.err (!%p281_p5)
}
 0x1b6   :  { %177 = dma.vmem_to_hbm [thread:$0]  %s175_s6, 128, %s351_s4, [#allocation4]  }
 0x1b7   :  { %297 = dma.done.wait [#allocation4], 128  }
 0x1b8   :  { %298 = vsyncadd [#allocation4], 4294967168 }
 0x1b9   :  { %181 = vsyncpa [#allocation3], 1 }
 0x1ba   :  { %182 = vsyncpa [#allocation6], 1 }
 0x1bb   :  { %183 = vsyncpa [#allocation4], 1 }

</bundles_post_ra>
